<compile_context>
chip_gen: v5e
topology: v5e:2x2
jax: 0.10.0
libtpu: 0.0.40
codegen_flags: <defaults>
</compile_context>

<pallas_src>
import functools

import jax
import jax.numpy as jnp
from jax.experimental import pallas as pl
from jax.experimental.pallas import tpu as pltpu

LANE = 128
SUBLANE = 8
HIDDEN = 64          # fc1 output size in the PyTorch module


def _round_up(n, m):
    return ((n + m - 1) // m) * m


def policy_kernel(x_ref, w1_ref, b_ref, w2_ref, o_ref, *, d_out):
    """One (tb, D_in) batch tile -> (tb, D_out) softmax probabilities.

    x_ref : (tb, D_in)      f32  (cast to bf16 in-kernel; VPU has slack)
    w1_ref: (D_in, h_pad)   bf16 (padded hidden columns are zero)
    b_ref : (2, h_pad)      f32  row 0 = fc1 bias (padded lanes 0), row 1[:d_out] = fc2 bias
    w2_ref: (h_pad, d_out)  bf16 (padded hidden rows are zero)
    o_ref : (tb, d_out)     f32
    """
    x = x_ref[...].astype(jnp.bfloat16)

    # fc1 + ReLU: bf16 MXU matmul, f32 accumulate / bias / activation.
    h = jnp.dot(x, w1_ref[...], preferred_element_type=jnp.float32)
    h = jnp.maximum(h + b_ref[0:1, :], 0.0)      # padded hidden lanes stay exactly 0

    # fc2 at the true output width -> no padded-logit masking needed.
    logits = jnp.dot(h.astype(jnp.bfloat16), w2_ref[...],
                     preferred_element_type=jnp.float32) + b_ref[1:2, :d_out]

    # Numerically stable softmax over the true D_out lanes; exact division so every
    # row sums to 1 at f32 precision.
    m = jnp.max(logits, axis=-1, keepdims=True)
    e = jnp.exp(logits - m)
    o_ref[...] = e / jnp.sum(e, axis=-1, keepdims=True)


def _choose_batch_block(B, block_b):
    """Batch tile: multiple of 8 (or == B), at most block_b, and >=2 grid steps for
    large batches so v7x's two TensorCores both get work under ("parallel",)."""
    if B <= SUBLANE:
        return max(B, 1)                          # block dim == full array dim -> legal
    tb = min(block_b, _round_up(B, SUBLANE))
    if B >= 64 and pl.cdiv(B, tb) < 2:            # would be a single block: split in two
        tb = _round_up(pl.cdiv(B, 2), SUBLANE)
    return tb


def policy_network_forward(x, w1, b1, w2, b2, *, block_b=1024):
    """Fused PolicyNetwork forward.

    x : (B, D_in)    f32
    w1: (D_in, 64)   f32 (transposed vs. PyTorch fc1.weight)
    b1: (64,)        f32
    w2: (64, D_out)  f32 (transposed vs. PyTorch fc2.weight)
    b2: (D_out,)     f32
    returns (B, D_out) f32 softmax probabilities.
    """
    B, D_in = x.shape
    H = w1.shape[1]
    D_out = w2.shape[1]
    h_pad = _round_up(H, LANE)

    # Lane-pad the hidden dimension once (tiny, trace-time); pack both biases into one
    # f32 operand so the resident params need only three DMA descriptors total.
    w1p = jnp.zeros((D_in, h_pad), jnp.float32).at[:, :H].set(w1).astype(jnp.bfloat16)
    w2p = jnp.zeros((h_pad, D_out), jnp.float32).at[:H, :].set(w2).astype(jnp.bfloat16)
    bias = jnp.zeros((2, h_pad), jnp.float32)
    bias = bias.at[0, :H].set(jnp.reshape(b1, (-1,)))
    bias = bias.at[1, :D_out].set(jnp.reshape(b2, (-1,)))

    tb = _choose_batch_block(B, block_b)
    grid = (pl.cdiv(B, tb),)   # last block may be partial: Pallas pads the input reads
                               # and clips the output writes to the (B, D_out) array.

    kernel = functools.partial(policy_kernel, d_out=D_out)

    return pl.pallas_call(
        kernel,
        out_shape=jax.ShapeDtypeStruct((B, D_out), jnp.float32),
        grid_spec=pltpu.PrefetchScalarGridSpec(
            num_scalar_prefetch=0,
            grid=grid,
            in_specs=[
                pl.BlockSpec((tb, D_in), lambda i: (i, 0)),       # x: tiled over batch
                pl.BlockSpec((D_in, h_pad), lambda i: (0, 0)),    # w1: resident (constant idx)
                pl.BlockSpec((2, h_pad), lambda i: (0, 0)),       # packed biases: resident
                pl.BlockSpec((h_pad, D_out), lambda i: (0, 0)),   # w2: resident
            ],
            out_specs=pl.BlockSpec((tb, D_out), lambda i: (i, 0)),  # true-width output
        ),
        compiler_params=pltpu.CompilerParams(
            dimension_semantics=("parallel",),  # v7x: both TensorCores split the batch
        ),
    )(x, w1p, bias, w2p)


def init_params(key, input_size, output_size, hidden=HIDDEN):
    """Deterministic init mimicking nn.Linear's U(-1/sqrt(fan_in), 1/sqrt(fan_in))."""
    k1, k2, k3, k4 = jax.random.split(key, 4)
    bound1 = 1.0 / jnp.sqrt(jnp.float32(input_size))
    bound2 = 1.0 / jnp.sqrt(jnp.float32(hidden))
    w1 = jax.random.uniform(k1, (input_size, hidden), jnp.float32, -bound1, bound1)
    b1 = jax.random.uniform(k2, (hidden,), jnp.float32, -bound1, bound1)
    w2 = jax.random.uniform(k3, (hidden, output_size), jnp.float32, -bound2, bound2)
    b2 = jax.random.uniform(k4, (output_size,), jnp.float32, -bound2, bound2)
    return w1, b1, w2, b2


def reference_forward_f32(x, w1, b1, w2, b2):
    h = jnp.maximum(x @ w1 + b1.reshape(1, -1), 0.0)
    logits = h @ w2 + b2.reshape(1, -1)
    return jax.nn.softmax(logits, axis=-1)


def reference_forward_bf16(x, w1, b1, w2, b2):
    """Same bf16-matmul / f32-accumulate math as the kernel (for a tight check)."""
    xb = x.astype(jnp.bfloat16)
    w1b = w1.astype(jnp.bfloat16)
    w2b = w2.astype(jnp.bfloat16)
    h = jnp.dot(xb, w1b, preferred_element_type=jnp.float32) + b1.reshape(1, -1)
    h = jnp.maximum(h, 0.0)
    logits = jnp.dot(h.astype(jnp.bfloat16), w2b,
                     preferred_element_type=jnp.float32) + b2.reshape(1, -1)
    return jax.nn.softmax(logits, axis=-1)


if __name__ == "__main__":
    key = jax.random.PRNGKey(0)
    kx, kp, kx2, kx3 = jax.random.split(key, 4)

    batch = 8
    input_size = 32
    output_size = 16

    x = jax.random.normal(kx, (batch, input_size), dtype=jnp.float32)
    w1, b1, w2, b2 = init_params(kp, input_size, output_size)

    out = jax.block_until_ready(policy_network_forward(x, w1, b1, w2, b2))
    ref32 = reference_forward_f32(x, w1, b1, w2, b2)
    refbf = reference_forward_bf16(x, w1, b1, w2, b2)

    assert out.shape == (batch, output_size)
    assert jnp.allclose(jnp.sum(out, axis=-1), 1.0, atol=1e-5)      # exact softmax division
    assert jnp.allclose(out, refbf, atol=2e-3)                      # same bf16 math
    assert jnp.allclose(out, ref32, atol=3e-2)                      # vs f32 reference

    # Larger batch -> two 200-row grid steps (both v7x TensorCores busy).
    big_b = 400
    xb = jax.random.normal(kx2, (big_b, input_size), dtype=jnp.float32)
    outb = jax.block_until_ready(policy_network_forward(xb, w1, b1, w2, b2))
    refb = reference_forward_f32(xb, w1, b1, w2, b2)
    assert outb.shape == (big_b, output_size)
    assert jnp.allclose(jnp.sum(outb, axis=-1), 1.0, atol=1e-5)
    assert jnp.allclose(outb, refb, atol=3e-2)

    # Non-divisible batch exercising the partial last grid block (no jnp.pad pass).
    odd_b = 500
    xo = jax.random.normal(kx3, (odd_b, input_size), dtype=jnp.float32)
    outo = jax.block_until_ready(policy_network_forward(xo, w1, b1, w2, b2))
    refo = reference_forward_f32(xo, w1, b1, w2, b2)
    assert outo.shape == (odd_b, output_size)
    assert jnp.allclose(jnp.sum(outo, axis=-1), 1.0, atol=1e-5)
    assert jnp.allclose(outo, refo, atol=3e-2)

    print("KERNEL_OK")
</pallas_src>

<mosaic_0001>
module attributes {stable_mosaic.version = 11 : i64} {
  func.func @policy_kernel(%arg0: i32, %arg1: memref<8x32xf32, #tpu.memory_space<vmem>>, %arg2: memref<32x128xbf16, #tpu.memory_space<vmem>>, %arg3: memref<2x128xf32, #tpu.memory_space<vmem>>, %arg4: memref<128x16xbf16, #tpu.memory_space<vmem>>, %arg5: memref<8x16xf32, #tpu.memory_space<vmem>>) attributes {dimension_semantics = [#tpu.dimension_semantics<parallel>], iteration_bounds = array<i64: 1>, scalar_prefetch = 0 : i64, scratch_operands = 0 : i64, tpu.core_type = #tpu.core_type<tc>, window_params = [{transform_indices = @transform_0, window_bounds = array<i64: 8, 32>}, {pipeline_mode = #tpu.pipeline_mode<synchronous>, transform_indices = @transform_1, window_bounds = array<i64: 32, 128>}, {pipeline_mode = #tpu.pipeline_mode<synchronous>, transform_indices = @transform_2, window_bounds = array<i64: 2, 128>}, {pipeline_mode = #tpu.pipeline_mode<synchronous>, transform_indices = @transform_3, window_bounds = array<i64: 128, 16>}, {transform_indices = @transform_4, window_bounds = array<i64: 8, 16>}]} {
    %c0 = arith.constant 0 : index
    %c0_0 = arith.constant 0 : index
    %0 = vector.load %arg1[%c0, %c0_0] : memref<8x32xf32, #tpu.memory_space<vmem>>, vector<8x32xf32>
    %1 = arith.truncf %0 : vector<8x32xf32> to vector<8x32xbf16>
    %c0_1 = arith.constant 0 : index
    %c0_2 = arith.constant 0 : index
    %2 = vector.load %arg2[%c0_1, %c0_2] : memref<32x128xbf16, #tpu.memory_space<vmem>>, vector<32x128xbf16>
    %cst = arith.constant dense<0.000000e+00> : vector<8x128xf32>
    %3 = tpu.matmul %1, %2, %cst {dimension_numbers = #tpu.dot_dimension_numbers<[1], [0], [0], [1], [0, 0, 1, 1], [], []>} : vector<8x32xbf16>, vector<32x128xbf16>, vector<8x128xf32> -> vector<8x128xf32>
    %c0_3 = arith.constant 0 : index
    %c0_4 = arith.constant 0 : index
    %4 = vector.load %arg3[%c0_3, %c0_4] : memref<2x128xf32, #tpu.memory_space<vmem>>, vector<1x128xf32>
    %5 = vector.broadcast %4 : vector<1x128xf32> to vector<8x128xf32>
    %6 = arith.addf %3, %5 : vector<8x128xf32>
    %cst_5 = arith.constant 0.000000e+00 : f32
    %7 = vector.broadcast %cst_5 : f32 to vector<8x128xf32>
    %8 = arith.maximumf %6, %7 : vector<8x128xf32>
    %9 = arith.truncf %8 : vector<8x128xf32> to vector<8x128xbf16>
    %c0_6 = arith.constant 0 : index
    %c0_7 = arith.constant 0 : index
    %10 = vector.load %arg4[%c0_6, %c0_7] : memref<128x16xbf16, #tpu.memory_space<vmem>>, vector<128x16xbf16>
    %cst_8 = arith.constant dense<0.000000e+00> : vector<8x16xf32>
    %11 = tpu.matmul %9, %10, %cst_8 {dimension_numbers = #tpu.dot_dimension_numbers<[1], [0], [0], [1], [0, 0, 1, 1], [], []>} : vector<8x128xbf16>, vector<128x16xbf16>, vector<8x16xf32> -> vector<8x16xf32>
    %c1 = arith.constant 1 : index
    %c0_9 = arith.constant 0 : index
    %12 = vector.load %arg3[%c1, %c0_9] : memref<2x128xf32, #tpu.memory_space<vmem>>, vector<1x16xf32>
    %13 = vector.broadcast %12 : vector<1x16xf32> to vector<8x16xf32>
    %14 = arith.addf %11, %13 : vector<8x16xf32>
    %cst_10 = arith.constant dense<0xFF800000> : vector<8xf32>
    %15 = vector.multi_reduction <maximumf>, %14, %cst_10 [1] : vector<8x16xf32> to vector<8xf32>
    %16 = vector.shape_cast %15 : vector<8xf32> to vector<8x1xf32>
    %17 = vector.broadcast %16 : vector<8x1xf32> to vector<8x16xf32>
    %18 = arith.subf %14, %17 : vector<8x16xf32>
    %19 = math.exp %18 : vector<8x16xf32>
    %cst_11 = arith.constant dense<0.000000e+00> : vector<8xf32>
    %20 = vector.multi_reduction <add>, %19, %cst_11 [1] : vector<8x16xf32> to vector<8xf32>
    %21 = vector.shape_cast %20 : vector<8xf32> to vector<8x1xf32>
    %22 = vector.broadcast %21 : vector<8x1xf32> to vector<8x16xf32>
    %23 = arith.divf %19, %22 : vector<8x16xf32>
    %c0_12 = arith.constant 0 : index
    %c0_13 = arith.constant 0 : index
    %24 = vector.load %arg5[%c0_12, %c0_13] : memref<8x16xf32, #tpu.memory_space<vmem>>, vector<8x16xf32>
    tpu.vector_store %arg5[%c0_12, %c0_13], %23 {strides = array<i32>} : memref<8x16xf32, #tpu.memory_space<vmem>>, vector<8x16xf32>,
    return
  }
  func.func @transform_0(%arg0: i32) -> (i32, i32) {
    %c0_i32 = arith.constant 0 : i32
    %c0_i32_0 = arith.constant 0 : i32
    return %arg0, %c0_i32 : i32, i32
  }
  func.func @transform_1(%arg0: i32) -> (i32, i32) {
    %c0_i32 = arith.constant 0 : i32
    %c0_i32_0 = arith.constant 0 : i32
    %c0_i32_1 = arith.constant 0 : i32
    return %c0_i32, %c0_i32_0 : i32, i32
  }
  func.func @transform_2(%arg0: i32) -> (i32, i32) {
    %c0_i32 = arith.constant 0 : i32
    %c0_i32_0 = arith.constant 0 : i32
    %c0_i32_1 = arith.constant 0 : i32
    return %c0_i32, %c0_i32_0 : i32, i32
  }
  func.func @transform_3(%arg0: i32) -> (i32, i32) {
    %c0_i32 = arith.constant 0 : i32
    %c0_i32_0 = arith.constant 0 : i32
    %c0_i32_1 = arith.constant 0 : i32
    return %c0_i32, %c0_i32_0 : i32, i32
  }
  func.func @transform_4(%arg0: i32) -> (i32, i32) {
    %c0_i32 = arith.constant 0 : i32
    %c0_i32_0 = arith.constant 0 : i32
    return %arg0, %c0_i32 : i32, i32
  }
}

</mosaic_0001>

<bundles_post_ra>
// kernel: tpu_custom_call.1
= control target key start
LH: loop header
LB: loop body
LE: loop exit
PB: predicated region body
PF: predicated region fallthrough
CT: control target
= control target key end

     0   :  { %s334_s0 = inlined_call_operand.vmem [shape: f32[8,32], index: 0, kind: input, shape index: {}]   ;;  %s335_s1 = inlined_call_operand.vmem [shape: bf16[32,128], index: 1, kind: input, shape index: {}]   ;;  %s336_s2 = inlined_call_operand.vmem [shape: f32[2,128], index: 2, kind: input, shape index: {}]   ;;  %s337_s3 = inlined_call_operand.vmem [shape: bf16[128,16], index: 3, kind: input, shape index: {}]   ;;  %s338_s4 = inlined_call_operand.hbm [shape: f32[8,16], index: 4, kind: output, shape index: {}]  }
   0x1   :  { %v221_v0 = vld [vmem:[%s335_s1 + $0x8] sm:$0xff]  ;;  %v229_v1 = vld [vmem:[%s337_s3 + $0x38] sm:$0xff]  ;;  %v220_v2 = vld [vmem:[%s335_s1] sm:$0xff] }
   0x2   :  { %49 = vmatpush.bf16.msra.mxu0 %v221_v0  ;;  %v19_v3 = vld [vmem:[%s334_s0] sm:$0xff]  ;;  %124 = vmatpush.bf16.msra.mxu1 %v229_v1  ;;  %v228_v4 = vld [vmem:[%s337_s3 + $0x30] sm:$0xff] }
   0x3   :  { %9 = vsyncpa [#allocation3], 0  ;;  %v20_v5 = vpack.c.bf16 %v19_v3, %v19_v3  ;;  %vm39_vm0 = vcmask 261120   ;;  %v227_v6 = vld [vmem:[%s337_s3 + $0x28] sm:$0xff]  ;;  %v226_v7 = vld [vmem:[%s337_s3 + $0x20] sm:$0xff]  ;;  %vm137_vm1 = vcmask 130048  }
   0x4   :  { %v225_v8 = vld [vmem:[%s337_s3 + $0x18] sm:$0xff]  ;;  %v224_v9 = vld [vmem:[%s337_s3 + $0x10] sm:$0xff]  ;;  %v223_v10 = vld [vmem:[%s337_s3 + $0x8] sm:$0xff]  ;;  %s170_s15 = sshll.u32 %s338_s4, 4  ;;  %s171_s15 = int_to_ptr.hbm [resolvable:$true] %s170_s15 }
   0x5   :  { %v222_v11 = vld [vmem:[%s337_s3] sm:$0xff] }
   0x6   :  { %50 = vmatpush.bf16.msra.mxu0 %v220_v2  ;;  %125 = vmatpush.bf16.msra.mxu1 %v228_v4  ;;  %v231_v12 = vld [vmem:[%s336_s2] ss:$0 sm:$0xff]  ;;  %v232_v18 = vld [vmem:[%s336_s2 + $0x1] ss:$0 sm:$0xff]  ;;  %s263_s2 = smov [#allocation2]  }
   0x7   :  { %s168_s3 = sshll.u32 %s263_s2, 4  ;;  %s169_s3 = int_to_ptr.vmem [resolvable:$true] %s168_s3 }
   0x9   :  { %187 = vmatmul.msk.bf16.vlgmr.msra.gmra.mxu0 %vm39_vm0, %v20_v5 }
   0xa   :  { %126 = vmatpush.bf16.msra.mxu1 %v227_v6 }
   0xe   :  { %127 = vmatpush.bf16.msra.mxu1 %v226_v7 }
  0x12   :  { %128 = vmatpush.bf16.msra.mxu1 %v225_v8 }
  0x16   :  { %129 = vmatpush.bf16.msra.mxu1 %v224_v9 }
  0x1a   :  { %130 = vmatpush.bf16.msra.mxu1 %v223_v10 }
  0x1e   :  { %131 = vmatpush.bf16.msra.mxu1 %v222_v11 }
  0x86   :  { %v52_v13 = vpop.f32.mrf.mxu0 }
  0x87   :  { %v53_v14 = vadd.f32 %v231_v12, %v52_v13 }
  0x89   :  { %v56_v15 = vmax.f32 %v53_v14, 0.0 }
  0x8b   :  { %v57_v16 = vpack.c.bf16 %v56_v15, %v56_v15 }
  0x8d   :  { %132 = vmatmul.bf16.vlgmr.msra.gmra.mxu1 %v57_v16 }
  0x8e   :  { %v54_v17 = vpop.f32.mrf.mxu0 }
 0x10a   :  { %v133_v19 = vpop.f32.mrf.mxu1 }
 0x10b   :  { %v134_v20 = vadd.f32 %v232_v18, %v133_v19 }
 0x10d   :  { %v138_v21 = vsel %vm137_vm1, %v134_v20, -inf }
 0x10e   :  { %139 = vmax.xlane.f32.xlu0 %v138_v21 }
 0x112   :  { %v135_v22 = vpop.f32.mrf.mxu1 }
 0x181   :  { %v140_v23 = vpop.xlane.xlu0 %139 }
 0x182   :  { %v141_v24 = vsub.f32 %v134_v20, %v140_v23 }
 0x184   :  { %v142_v25 = vmul.f32 1.442695, %v141_v24 }
 0x186   :  { %233 = vpow2.f32 %v142_v25 }
 0x18c   :  { %v234_v26 = vpop.eup %233 }
 0x18d   :  { %v144_v27 = vsel %vm137_vm1, %v234_v26, 0.0 }
 0x18e   :  { %145 = vadd.xlane.f32.xlu0 %v144_v27 }
 0x201   :  { %v146_v28 = vpop.xlane.xlu0 %145 }
 0x202   :  { %235 = vrcp.f32 %v146_v28  ;;  %v158_v32 = vand.u32 2147483648, %v146_v28  ;;  %v156_v34 = vand.u32 2147483647, %v146_v28  ;;  %vm152_vm3 = vweird.f32 %v146_v28 }
 0x204   :  { %v159_v36 = vor.u32 1.1754944e-38, %v158_v32  ;;  %vm157_vm5 = vcmp.eq.f32.partialorder %v156_v34, 8.507059e+37 }
 0x208   :  { %v236_v29 = vpop.eup %235 }
 0x209   :  { %v148_v30 = vmul.f32 %v236_v29, %v146_v28  ;;  %vm153_vm2 = vweird.f32 %v236_v29 }
 0x20a   :  { %vm154_vm4 = vmor %vm152_vm3, %vm153_vm2 }
 0x20b   :  { %v149_v31 = vsub.f32 1.0, %v148_v30 }
 0x20d   :  { %v150_v33 = vmul.f32 %v236_v29, %v149_v31 }
 0x20f   :  { %v151_v35 = vadd.f32 %v236_v29, %v150_v33 }
 0x211   :  { %v155_v37 = vsel %vm154_vm4, %v236_v29, %v151_v35 }
 0x212   :  { %v160_v38 = vsel %vm157_vm5, %v159_v36, %v155_v37 }
 0x213   :  { %v161_v39 = vmul.f32 %v234_v26, %v160_v38 }
 0x215   :  { %162 = vst.msk [vmem:[#allocation2] sm:$0xff] %vm137_vm1, %v161_v39 }
 0x216   :  { %173 = dma.vmem_to_hbm [thread:$0]  %s169_s3, 128, %s171_s15, [#allocation3]  }
 0x217   :  { %261 = dma.done.wait [#allocation3], 128  }
 0x218   :  { %262 = vsyncadd [#allocation3], 4294967168 }
 0x219   :  { %178 = vsyncpa [#allocation3], 1 }

</bundles_post_ra>
